<compile_context>
chip_gen: v5e
topology: v5e:2x2
jax: 0.10.0
libtpu: 0.0.40
codegen_flags: <defaults>
</compile_context>

<pallas_src>
import functools

import jax
import jax.numpy as jnp
from jax.experimental import pallas as pl
from jax.experimental.pallas import tpu as pltpu

_LANE = 128
_SUBLANE = 8


# ---------------------------------------------------------------------------
# Kernel bodies
# ---------------------------------------------------------------------------
def _band_matmul(w, x):
    """f32 moving-window *sum* of x rows.  w is an exact integer band in bf16.

    bf16 x -> one MXU pass.  f32 x -> hi/lo bf16 split, two MXU passes
    (error ~2^-17 relative, well inside 1e-5 of an f32 reference).
    """
    if x.dtype == jnp.bfloat16:
        return jnp.dot(w, x, preferred_element_type=jnp.float32)
    xf = x.astype(jnp.float32)
    hi = xf.astype(jnp.bfloat16)
    lo = (xf - hi.astype(jnp.float32)).astype(jnp.bfloat16)
    return (jnp.dot(w, hi, preferred_element_type=jnp.float32)
            + jnp.dot(w, lo, preferred_element_type=jnp.float32))


def _decomp_kernel(w_ref, x_ref, res_ref, mean_ref, *, inv_k):
    # w_ref: (T, T) bf16 integer band; x_ref/res_ref/mean_ref: (T, Cb).
    mean = _band_matmul(w_ref[...], x_ref[...]) * inv_k      # post-scale in f32
    mean_ref[...] = mean.astype(mean_ref.dtype)
    # Re-read x from the ref for the residual (no full f32 upcast kept live
    # across the MXU op).
    res_ref[...] = (x_ref[...].astype(jnp.float32) - mean).astype(res_ref.dtype)


def _decomp_kernel_rowtiled(w_ref, x_full_ref, x_rows_ref, res_ref, mean_ref,
                            *, inv_k):
    # w_ref: (Tm, T) streamed row tile of the band; x_full_ref: (T, Cb);
    # x_rows_ref/res_ref/mean_ref: (Tm, Cb).
    mean = _band_matmul(w_ref[...], x_full_ref[...]) * inv_k
    mean_ref[...] = mean.astype(mean_ref.dtype)
    res_ref[...] = (x_rows_ref[...].astype(jnp.float32)
                    - mean).astype(res_ref.dtype)


# ---------------------------------------------------------------------------
# Static helpers (trace-time only)
# ---------------------------------------------------------------------------
def _build_band_weights(seq_len, kernel_size):
    """W[t, s] = number of window taps of output t that land on input s.

    Window positions are clamped to [0, seq_len-1], which reproduces the
    module's front/end replication padding exactly.  Entries are small
    integers (<= (kernel_size+1)//2), hence exact in bfloat16; the
    1/kernel_size scale is applied after the matmul in f32.
    """
    pad = (kernel_size - 1) // 2
    t_out = seq_len + 2 * pad - kernel_size + 1              # == seq_len (odd k)
    win = (jnp.arange(t_out)[:, None] - pad
           + jnp.arange(kernel_size)[None, :])
    win = jnp.clip(win, 0, seq_len - 1)                      # clamp == replicate
    rows = jnp.broadcast_to(jnp.arange(t_out)[:, None], win.shape)
    w = jnp.zeros((t_out, seq_len), jnp.float32).at[rows, win].add(1.0)
    return w.astype(jnp.bfloat16)


def _vmem_capacity_bytes():
    try:
        return int(pltpu.get_tpu_info().vmem_capacity_bytes)
    except Exception:
        return 64 << 20                       # conservative (v7x per-core VMEM)


def _footprint_bytes(T, tm, cb, x_bytes, n_w_buf):
    w = tm * T * 2 * n_w_buf                  # bf16 band block(s)
    x_full = T * cb * x_bytes * 2             # double-buffered x
    x_rows = 0 if tm == T else tm * cb * x_bytes * 2
    outs = 2 * tm * cb * x_bytes * 2          # res + mean, double-buffered
    temps = 2 * T * cb * 2 + 3 * tm * cb * 4  # hi/lo bf16 + f32 acc/mean/res
    return w + x_full + x_rows + outs + temps


def _plan_tiles(B, T, C, x_bytes, vmem_cap):
    """Pick (channel_tile, row_tile) from the device VMEM capacity."""
    budget = (min(vmem_cap, 128 << 20) * 2) // 5             # ~40% of VMEM

    if C <= _LANE:
        # Full channel extent: [B, T, C] keeps per-batch HBM transfers
        # contiguous; padding C to 128 would multiply HBM traffic instead.
        cb_opts = [C]
    else:
        cb_opts = [c for c in (512, 256, 128) if c <= C]

    cb = None
    tm = T
    for cand in cb_opts:               # prefer keeping the whole band resident
        if _footprint_bytes(T, T, cand, x_bytes, n_w_buf=1) <= budget:
            cb = cand
            break
    if cb is None:                     # large T: stream (Tm, T) row tiles of W
        cb = cb_opts[-1]
        tm = max(_SUBLANE, (T // 2) // _SUBLANE * _SUBLANE)
        while tm > _SUBLANE and _footprint_bytes(T, tm, cb, x_bytes, 2) > budget:
            tm = max(_SUBLANE, (tm // 2) // _SUBLANE * _SUBLANE)

    # v7x has two TensorCores: guarantee >= 2 parallel grid steps when there
    # is enough work to be worth splitting.
    if B * pl.cdiv(C, cb) * pl.cdiv(T, tm) < 2 and T >= 256:
        half = -(-((T + 1) // 2) // _SUBLANE) * _SUBLANE
        if half < T:
            tm = half
    return cb, tm


# ---------------------------------------------------------------------------
# pallas_call wrapper
# ---------------------------------------------------------------------------
@functools.partial(jax.jit, static_argnums=(1, 2, 3, 4))
def _series_decomp_impl(x, kernel_size, block_t, block_c, w_single_buffer):
    B, T, C = x.shape
    x_bytes = x.dtype.itemsize
    inv_k = 1.0 / float(kernel_size)
    w = _build_band_weights(T, kernel_size)                  # (T, T) bf16

    vmem_cap = _vmem_capacity_bytes()
    cb, tm = _plan_tiles(B, T, C, x_bytes, vmem_cap)
    if block_c is not None:
        cb = int(block_c)
    if block_t is not None:
        tm = int(block_t)

    n_c = pl.cdiv(C, cb)
    n_r = pl.cdiv(T, tm)
    row_tiled = n_r > 1
    single_buf_w = w_single_buffer and not row_tiled

    fp = _footprint_bytes(T, tm, cb, x_bytes, 1 if single_buf_w else 2)
    vmem_limit = int(min(vmem_cap, max(32 << 20, 2 * fp)))

    mxu_passes = 1 if x.dtype == jnp.bfloat16 else 2
    cost = pl.CostEstimate(
        flops=2 * B * T * T * C * mxu_passes,
        transcendentals=0,
        bytes_accessed=int((3 + (1 if row_tiled else 0)) * B * T * C * x_bytes
                           + T * T * 2))

    out_shape = (jax.ShapeDtypeStruct((B, T, C), x.dtype),   # res
                 jax.ShapeDtypeStruct((B, T, C), x.dtype))   # moving_mean

    if not row_tiled:
        if single_buf_w:
            w_spec = pl.BlockSpec((T, T), lambda b, c: (0, 0),
                                  pipeline_mode=pl.Buffered(1))
        else:
            w_spec = pl.BlockSpec((T, T), lambda b, c: (0, 0))
        grid = (B, n_c)
        in_specs = [w_spec,
                    pl.BlockSpec((None, T, cb), lambda b, c: (b, 0, c))]
        out_specs = [pl.BlockSpec((None, T, cb), lambda b, c: (b, 0, c)),
                     pl.BlockSpec((None, T, cb), lambda b, c: (b, 0, c))]
        kernel = functools.partial(_decomp_kernel, inv_k=inv_k)
        dims = ("parallel", "parallel")
        operands = (w, x)
    else:
        # Row-tiled band: W streamed as (Tm, T) blocks; x passed twice (once
        # full-T for the contraction, once row-blocked for the residual) so
        # ragged row tails are handled by Pallas masking, never by OOB slices.
        grid = (B, n_c, n_r)
        in_specs = [pl.BlockSpec((tm, T), lambda b, c, r: (r, 0)),
                    pl.BlockSpec((None, T, cb), lambda b, c, r: (b, 0, c)),
                    pl.BlockSpec((None, tm, cb), lambda b, c, r: (b, r, c))]
        out_specs = [pl.BlockSpec((None, tm, cb), lambda b, c, r: (b, r, c)),
                     pl.BlockSpec((None, tm, cb), lambda b, c, r: (b, r, c))]
        kernel = functools.partial(_decomp_kernel_rowtiled, inv_k=inv_k)
        dims = ("parallel", "parallel", "parallel")
        operands = (w, x, x)

    res, mean = pl.pallas_call(
        kernel,
        out_shape=out_shape,
        grid_spec=pltpu.PrefetchScalarGridSpec(
            num_scalar_prefetch=0,
            grid=grid,
            in_specs=in_specs,
            out_specs=out_specs),
        compiler_params=pltpu.CompilerParams(
            dimension_semantics=dims,
            vmem_limit_bytes=vmem_limit),
        cost_estimate=cost,
    )(*operands)
    return res, mean


def series_decomp(x, kernel_size, *, block_t=None, block_c=None):
    """series_decomp forward.  x: [B, T, C] -> (res, moving_mean)."""
    if kernel_size % 2 != 1:
        raise ValueError("series_decomp requires an odd kernel_size (the "
                         "module's `res = x - moving_mean` assumes it).")
    if kernel_size > 256:
        # TODO(synk): fall back to an f32/split band for k > 256, where the
        # integer tap counts stop being exact in bfloat16.
        raise ValueError("kernel_size > 256 not supported by the bf16 band.")
    try:
        return _series_decomp_impl(x, kernel_size, block_t, block_c, True)
    except Exception:
        # Fallback if this JAX build rejects pipeline_mode=pl.Buffered(1).
        return _series_decomp_impl(x, kernel_size, block_t, block_c, False)


# ---------------------------------------------------------------------------
# Pure-JAX reference (matches the PyTorch module semantics)
# ---------------------------------------------------------------------------
def _reference(x, kernel_size):
    pad = (kernel_size - 1) // 2
    B, T, C = x.shape
    xf = x.astype(jnp.float32)
    front = jnp.broadcast_to(xf[:, 0:1, :], (B, pad, C))
    end = jnp.broadcast_to(xf[:, -1:, :], (B, pad, C))
    xp = jnp.concatenate([front, xf, end], axis=1)
    t_out = xp.shape[1] - kernel_size + 1
    mean = jnp.stack(
        [xp[:, j:j + t_out, :] for j in range(kernel_size)], axis=0
    ).mean(axis=0)
    res = xf - mean
    return res, mean


if __name__ == "__main__":
    key = jax.random.PRNGKey(0)
    k1, k2, k3 = jax.random.split(key, 3)

    # 1) Small f32 case (resident-W path, hi/lo two-pass MXU).
    x1 = jax.random.normal(k1, (2, 16, 8), dtype=jnp.float32)
    res1, mean1 = series_decomp(x1, 5)
    jax.block_until_ready((res1, mean1))
    rr1, mr1 = _reference(x1, 5)
    assert jnp.allclose(mean1, mr1, atol=1e-4, rtol=1e-5), \
        float(jnp.max(jnp.abs(mean1 - mr1)))
    assert jnp.allclose(res1, rr1, atol=1e-4, rtol=1e-5), \
        float(jnp.max(jnp.abs(res1 - rr1)))

    # 2) bf16 inputs (single-pass MXU path, bf16 DMA).
    xb = x1.astype(jnp.bfloat16)
    res2, mean2 = series_decomp(xb, 5)
    rr2, mr2 = _reference(xb, 5)
    assert jnp.allclose(mean2.astype(jnp.float32), mr2, atol=3e-2, rtol=3e-2)
    assert jnp.allclose(res2.astype(jnp.float32), rr2, atol=3e-2, rtol=3e-2)

    # 3) Forced row-tiled-W path (streamed (Tm, T) band blocks, dual x specs).
    x3 = jax.random.normal(k2, (1, 32, 8), dtype=jnp.float32)
    res3, mean3 = series_decomp(x3, 7, block_t=16)
    rr3, mr3 = _reference(x3, 7)
    assert jnp.allclose(mean3, mr3, atol=1e-4, rtol=1e-5)
    assert jnp.allclose(res3, rr3, atol=1e-4, rtol=1e-5)

    # 4) Non-dividing channel tiles (ragged last lane block, C=192 / Cb=128).
    x4 = jax.random.normal(k3, (1, 16, 192), dtype=jnp.float32)
    res4, mean4 = series_decomp(x4, 5, block_c=128)
    rr4, mr4 = _reference(x4, 5)
    assert jnp.allclose(mean4, mr4, atol=1e-4, rtol=1e-5)
    assert jnp.allclose(res4, rr4, atol=1e-4, rtol=1e-5)

    jax.block_until_ready((res4, mean4))
    print("KERNEL_OK")
</pallas_src>

<mosaic_0001>
module attributes {stable_mosaic.version = 11 : i64} {
  func.func @_decomp_kernel(%arg0: i32, %arg1: i32, %arg2: memref<16x16xbf16, #tpu.memory_space<vmem>>, %arg3: memref<1x16x8xf32, #tpu.memory_space<vmem>>, %arg4: memref<1x16x8xf32, #tpu.memory_space<vmem>>, %arg5: memref<1x16x8xf32, #tpu.memory_space<vmem>>) attributes {dimension_semantics = [#tpu.dimension_semantics<parallel>, #tpu.dimension_semantics<parallel>], iteration_bounds = array<i64: 2, 1>, scalar_prefetch = 0 : i64, scratch_operands = 0 : i64, tpu.core_type = #tpu.core_type<tc>, window_params = [{pipeline_mode = #tpu.pipeline_mode<synchronous>, transform_indices = @transform_0, window_bounds = array<i64: 16, 16>}, {transform_indices = @transform_1, window_bounds = array<i64: 1, 16, 8>}, {transform_indices = @transform_2, window_bounds = array<i64: 1, 16, 8>}, {transform_indices = @transform_3, window_bounds = array<i64: 1, 16, 8>}]} {
    %c0 = arith.constant 0 : index
    %c0_0 = arith.constant 0 : index
    %0 = vector.load %arg2[%c0, %c0_0] : memref<16x16xbf16, #tpu.memory_space<vmem>>, vector<16x16xbf16>
    %c0_1 = arith.constant 0 : index
    %c0_2 = arith.constant 0 : index
    %c0_3 = arith.constant 0 : index
    %1 = vector.load %arg3[%c0_1, %c0_2, %c0_3] : memref<1x16x8xf32, #tpu.memory_space<vmem>>, vector<1x16x8xf32>
    %2 = vector.shape_cast %1 : vector<1x16x8xf32> to vector<16x8xf32>
    %3 = arith.truncf %2 : vector<16x8xf32> to vector<16x8xbf16>
    %4 = arith.extf %3 : vector<16x8xbf16> to vector<16x8xf32>
    %5 = arith.subf %2, %4 : vector<16x8xf32>
    %6 = arith.truncf %5 : vector<16x8xf32> to vector<16x8xbf16>
    %cst = arith.constant dense<0.000000e+00> : vector<16x8xf32>
    %7 = tpu.matmul %0, %3, %cst {dimension_numbers = #tpu.dot_dimension_numbers<[1], [0], [0], [1], [0, 0, 1, 1], [], []>} : vector<16x16xbf16>, vector<16x8xbf16>, vector<16x8xf32> -> vector<16x8xf32>
    %cst_4 = arith.constant dense<0.000000e+00> : vector<16x8xf32>
    %8 = tpu.matmul %0, %6, %cst_4 {dimension_numbers = #tpu.dot_dimension_numbers<[1], [0], [0], [1], [0, 0, 1, 1], [], []>} : vector<16x16xbf16>, vector<16x8xbf16>, vector<16x8xf32> -> vector<16x8xf32>
    %9 = arith.addf %7, %8 : vector<16x8xf32>
    %cst_5 = arith.constant 2.000000e-01 : f32
    %10 = vector.broadcast %cst_5 : f32 to vector<16x8xf32>
    %11 = arith.mulf %9, %10 : vector<16x8xf32>
    %c0_6 = arith.constant 0 : index
    %c0_7 = arith.constant 0 : index
    %c0_8 = arith.constant 0 : index
    %12 = vector.load %arg5[%c0_6, %c0_7, %c0_8] : memref<1x16x8xf32, #tpu.memory_space<vmem>>, vector<1x16x8xf32>
    %13 = vector.shape_cast %12 : vector<1x16x8xf32> to vector<16x8xf32>
    %14 = vector.shape_cast %11 : vector<16x8xf32> to vector<1x16x8xf32>
    tpu.vector_store %arg5[%c0_6, %c0_7, %c0_8], %14 {strides = array<i32>} : memref<1x16x8xf32, #tpu.memory_space<vmem>>, vector<1x16x8xf32>,
    %c0_9 = arith.constant 0 : index
    %c0_10 = arith.constant 0 : index
    %c0_11 = arith.constant 0 : index
    %15 = vector.load %arg3[%c0_9, %c0_10, %c0_11] : memref<1x16x8xf32, #tpu.memory_space<vmem>>, vector<1x16x8xf32>
    %16 = vector.shape_cast %15 : vector<1x16x8xf32> to vector<16x8xf32>
    %17 = arith.subf %16, %11 : vector<16x8xf32>
    %c0_12 = arith.constant 0 : index
    %c0_13 = arith.constant 0 : index
    %c0_14 = arith.constant 0 : index
    %18 = vector.load %arg4[%c0_12, %c0_13, %c0_14] : memref<1x16x8xf32, #tpu.memory_space<vmem>>, vector<1x16x8xf32>
    %19 = vector.shape_cast %18 : vector<1x16x8xf32> to vector<16x8xf32>
    %20 = vector.shape_cast %17 : vector<16x8xf32> to vector<1x16x8xf32>
    tpu.vector_store %arg4[%c0_12, %c0_13, %c0_14], %20 {strides = array<i32>} : memref<1x16x8xf32, #tpu.memory_space<vmem>>, vector<1x16x8xf32>,
    return
  }
  func.func @transform_0(%arg0: i32, %arg1: i32) -> (i32, i32) {
    %c0_i32 = arith.constant 0 : i32
    %c0_i32_0 = arith.constant 0 : i32
    %c0_i32_1 = arith.constant 0 : i32
    return %c0_i32, %c0_i32_0 : i32, i32
  }
  func.func @transform_1(%arg0: i32, %arg1: i32) -> (i32, i32, i32) {
    %c0_i32 = arith.constant 0 : i32
    %c0_i32_0 = arith.constant 0 : i32
    return %arg0, %c0_i32, %arg1 : i32, i32, i32
  }
  func.func @transform_2(%arg0: i32, %arg1: i32) -> (i32, i32, i32) {
    %c0_i32 = arith.constant 0 : i32
    %c0_i32_0 = arith.constant 0 : i32
    return %arg0, %c0_i32, %arg1 : i32, i32, i32
  }
  func.func @transform_3(%arg0: i32, %arg1: i32) -> (i32, i32, i32) {
    %c0_i32 = arith.constant 0 : i32
    %c0_i32_0 = arith.constant 0 : i32
    return %arg0, %c0_i32, %arg1 : i32, i32, i32
  }
}

module attributes {stable_mosaic.version = 11 : i64} {
  func.func @_decomp_kernel(%arg0: i32, %arg1: i32, %arg2: memref<16x16xbf16, #tpu.memory_space<vmem>>, %arg3: memref<1x16x8xf32, #tpu.memory_space<vmem>>, %arg4: memref<1x16x8xf32, #tpu.memory_space<vmem>>, %arg5: memref<1x16x8xf32, #tpu.memory_space<vmem>>) attributes {dimension_semantics = [#tpu.dimension_semantics<parallel>, #tpu.dimension_semantics<parallel>], iteration_bounds = array<i64: 2, 1>, scalar_prefetch = 0 : i64, scratch_operands = 0 : i64, tpu.core_type = #tpu.core_type<tc>, window_params = [{pipeline_mode = #tpu.pipeline_mode<synchronous>, transform_indices = @transform_0, window_bounds = array<i64: 16, 16>}, {transform_indices = @transform_1, window_bounds = array<i64: 1, 16, 8>}, {transform_indices = @transform_2, window_bounds = array<i64: 1, 16, 8>}, {transform_indices = @transform_3, window_bounds = array<i64: 1, 16, 8>}]} {
    %c0 = arith.constant 0 : index
    %c0_0 = arith.constant 0 : index
    %0 = vector.load %arg2[%c0, %c0_0] : memref<16x16xbf16, #tpu.memory_space<vmem>>, vector<16x16xbf16>
    %c0_1 = arith.constant 0 : index
    %c0_2 = arith.constant 0 : index
    %c0_3 = arith.constant 0 : index
    %1 = vector.load %arg3[%c0_1, %c0_2, %c0_3] : memref<1x16x8xf32, #tpu.memory_space<vmem>>, vector<1x16x8xf32>
    %2 = vector.shape_cast %1 : vector<1x16x8xf32> to vector<16x8xf32>
    %3 = arith.truncf %2 : vector<16x8xf32> to vector<16x8xbf16>
    %4 = arith.extf %3 : vector<16x8xbf16> to vector<16x8xf32>
    %5 = arith.subf %2, %4 : vector<16x8xf32>
    %6 = arith.truncf %5 : vector<16x8xf32> to vector<16x8xbf16>
    %cst = arith.constant dense<0.000000e+00> : vector<16x8xf32>
    %7 = tpu.matmul %0, %3, %cst {dimension_numbers = #tpu.dot_dimension_numbers<[1], [0], [0], [1], [0, 0, 1, 1], [], []>} : vector<16x16xbf16>, vector<16x8xbf16>, vector<16x8xf32> -> vector<16x8xf32>
    %cst_4 = arith.constant dense<0.000000e+00> : vector<16x8xf32>
    %8 = tpu.matmul %0, %6, %cst_4 {dimension_numbers = #tpu.dot_dimension_numbers<[1], [0], [0], [1], [0, 0, 1, 1], [], []>} : vector<16x16xbf16>, vector<16x8xbf16>, vector<16x8xf32> -> vector<16x8xf32>
    %9 = arith.addf %7, %8 : vector<16x8xf32>
    %cst_5 = arith.constant 2.000000e-01 : f32
    %10 = vector.broadcast %cst_5 : f32 to vector<16x8xf32>
    %11 = arith.mulf %9, %10 : vector<16x8xf32>
    %c0_6 = arith.constant 0 : index
    %c0_7 = arith.constant 0 : index
    %c0_8 = arith.constant 0 : index
    %12 = vector.load %arg5[%c0_6, %c0_7, %c0_8] : memref<1x16x8xf32, #tpu.memory_space<vmem>>, vector<1x16x8xf32>
    %13 = vector.shape_cast %12 : vector<1x16x8xf32> to vector<16x8xf32>
    %14 = vector.shape_cast %11 : vector<16x8xf32> to vector<1x16x8xf32>
    tpu.vector_store %arg5[%c0_6, %c0_7, %c0_8], %14 {strides = array<i32>} : memref<1x16x8xf32, #tpu.memory_space<vmem>>, vector<1x16x8xf32>,
    %c0_9 = arith.constant 0 : index
    %c0_10 = arith.constant 0 : index
    %c0_11 = arith.constant 0 : index
    %15 = vector.load %arg3[%c0_9, %c0_10, %c0_11] : memref<1x16x8xf32, #tpu.memory_space<vmem>>, vector<1x16x8xf32>
    %16 = vector.shape_cast %15 : vector<1x16x8xf32> to vector<16x8xf32>
    %17 = arith.subf %16, %11 : vector<16x8xf32>
    %c0_12 = arith.constant 0 : index
    %c0_13 = arith.constant 0 : index
    %c0_14 = arith.constant 0 : index
    %18 = vector.load %arg4[%c0_12, %c0_13, %c0_14] : memref<1x16x8xf32, #tpu.memory_space<vmem>>, vector<1x16x8xf32>
    %19 = vector.shape_cast %18 : vector<1x16x8xf32> to vector<16x8xf32>
    %20 = vector.shape_cast %17 : vector<16x8xf32> to vector<1x16x8xf32>
    tpu.vector_store %arg4[%c0_12, %c0_13, %c0_14], %20 {strides = array<i32>} : memref<1x16x8xf32, #tpu.memory_space<vmem>>, vector<1x16x8xf32>,
    return
  }
  func.func @transform_0(%arg0: i32, %arg1: i32) -> (i32, i32) {
    %c0_i32 = arith.constant 0 : i32
    %c0_i32_0 = arith.constant 0 : i32
    %c0_i32_1 = arith.constant 0 : i32
    return %c0_i32, %c0_i32_0 : i32, i32
  }
  func.func @transform_1(%arg0: i32, %arg1: i32) -> (i32, i32, i32) {
    %c0_i32 = arith.constant 0 : i32
    %c0_i32_0 = arith.constant 0 : i32
    return %arg0, %c0_i32, %arg1 : i32, i32, i32
  }
  func.func @transform_2(%arg0: i32, %arg1: i32) -> (i32, i32, i32) {
    %c0_i32 = arith.constant 0 : i32
    %c0_i32_0 = arith.constant 0 : i32
    return %arg0, %c0_i32, %arg1 : i32, i32, i32
  }
  func.func @transform_3(%arg0: i32, %arg1: i32) -> (i32, i32, i32) {
    %c0_i32 = arith.constant 0 : i32
    %c0_i32_0 = arith.constant 0 : i32
    return %arg0, %c0_i32, %arg1 : i32, i32, i32
  }
}

</mosaic_0001>

<bundles_post_ra>
// kernel: _series_decomp_impl.1
= control target key start
LH: loop header
LB: loop body
LE: loop exit
PB: predicated region body
PF: predicated region fallthrough
CT: control target
= control target key end

     0   :  { %s510_s12 = smov 0   ;;  %s512_s13 = smov 0   ;;  %s549_s0 = inlined_call_operand.vmem [shape: bf16[16,16], index: 0, kind: input, shape index: {}]   ;;  %s550_s1 = inlined_call_operand.vmem [shape: f32[2,16,8], index: 1, kind: input, shape index: {}]   ;;  %s551_s2 = inlined_call_operand.vmem [shape: f32[2,16,8], index: 2, kind: output, shape index: {0}]   ;;  %s552_s3 = inlined_call_operand.vmem [shape: f32[2,16,8], index: 3, kind: output, shape index: {1}]  }
   0x1   :  { %s514_s14 = smov 0  }
   0x2 LB: > { %s26_s15 = sadd.s32 1, %s484_s13  ;;  %p423_p0 = scmp.ge.s32.totalorder %s488_s14, 1  ;;  %s488_s14 = sphi %s514_s14, %s14_s14   ;;  %s484_s13 = sphi %s512_s13, %s554_s13   ;;  %s480_s12 = sphi %s510_s12, %s553_s12  }
   0x3   : > { %p28_p1 = scmp.ge.s32.totalorder %s26_s15, 2  ;;  %p161_p2 = scmp.lt.s32.totalorder %s488_s14, 3 }
   0x5   : > { %s556_s15 = smov (%p28_p1, %s26_s15), 0  ;;  %p162_p3 = pnand %p423_p0, %p161_p2 }
   0x6   : > { %p199_p4 = scmp.lt.s32.totalorder (!%p162_p3), %s480_s12, 1 }
   0x7   : > { %165 = sbr.rel (%p162_p3) target bundleno = 168 (0xa8), region = 28 }
   0xc   : > { %s558_s12 = smov (!%p199_p4, %s480_s12), 1  ;;  %v441_v11 = vld [vmem:[%s549_s0] sm:$0xff]  ;;  %vm240_vm0 = vcmask 130048   ;;  %vm280_vm1 = vcmask 64512  }
   0xd   : > { %s438_s16 = sshll.u32 %s558_s12, 4 }
   0xe   : > { %s206_s19 = scalar_lea.vmem %s550_s1, %s438_s16  ;;  %s222_s24 = scalar_lea.vmem %s552_s3, %s438_s16 }
   0xf   : > { %v226_v0 = vld [vmem:[%s206_s19] sm:$0xff]  ;;  %v227_v1 = vld [vmem:[%s206_s19 + $0x8] sm:$0xff]  ;;  %s214_s27 = scalar_lea.vmem %s551_s2, %s438_s16 }
  0x10   : > { %v228_v2 = vpack.c.bf16 %v226_v0, %v226_v0  ;;  %v229_v3 = vpack.c.bf16 %v227_v1, %v227_v1 }
  0x12   : > { %v260_v4 = vunpack.c.l.b16 %v228_v2  ;;  %v261_v5 = vunpack.c.l.b16 %v229_v3  ;;  %v230_v6 = vunpack.c.l.bf16 %v228_v2  ;;  %v231_v7 = vunpack.c.l.bf16 %v229_v3 }
  0x14   : > { %v262_v8 = vpack.c.b16 %v261_v5, %v260_v4  ;;  %v232_v9 = vsub.f32 %v226_v0, %v230_v6  ;;  %v233_v10 = vsub.f32 %v227_v1, %v231_v7 }
  0x16   : > { %271 = vmatpush.bf16.msra.mxu1 %v262_v8  ;;  %v234_v12 = vpack.c.bf16 %v233_v10, %v232_v9 }
  0x18   : > { %251 = vmatpush.bf16.msra.mxu0 %v234_v12 }
  0x19   : > { %435 = vmatmul.msk.bf16.vlgmr.msra.gmra.mxu1 %vm240_vm0, %v441_v11 }
  0x1b   : > { %434 = vmatmul.msk.bf16.vlgmr.msra.gmra.mxu0 %vm240_vm0, %v441_v11 }
  0x96   : > { %v273_v13 = vpop.f32.mrf.mxu1 }
  0x98   : > { %v253_v14 = vpop.f32.mrf.mxu0 }
  0x99   : > { %v274_v15 = vadd.f32 %v273_v13, %v253_v14 }
  0x9b   : > { %v278_v16 = vmul.f32 0.2, %v274_v15 }
  0x9d   : > { %281 = vst.msk [vmem:[%s222_s24] sm:$0xff] %vm280_vm1, %v278_v16  ;;  %v285_v17 = vsub.f32 %v226_v0, %v278_v16 }
  0x9e   : > { %v275_v18 = vpop.f32.mrf.mxu1 }
  0x9f   : > { %287 = vst.msk [vmem:[%s214_s27] sm:$0xff] %vm280_vm1, %v285_v17 }
  0xa0   : > { %v255_v19 = vpop.f32.mrf.mxu0 }
  0xa1   : > { %v276_v20 = vadd.f32 %v275_v18, %v255_v19 }
  0xa3   : > { %v279_v21 = vmul.f32 0.2, %v276_v20 }
  0xa5   : > { %282 = vst.msk [vmem:[%s222_s24 + $0x8] sm:$0xff] %vm280_vm1, %v279_v21  ;;  %v286_v22 = vsub.f32 %v227_v1, %v279_v21 }
  0xa7   : > { %288 = vst.msk [vmem:[%s214_s27 + $0x8] sm:$0xff] %vm280_vm1, %v286_v22 }
  0xa8 PF: > { %s14_s14 = sadd.s32 1, %s488_s14   ;;  %s553_s12 = smov %s484_s13 }
  0xa9   : > { %p11_p5 = scmp.ge.s32.totalorder %s14_s14, 4   ;;  %s554_s13 = smov %s556_s15 }
  0xab   :  { %13 = sbr.rel (!%p11_p5) target bundleno = 2 (0x2), region = 70 }

// kernel: _series_decomp_impl.1
= control target key start
LH: loop header
LB: loop body
LE: loop exit
PB: predicated region body
PF: predicated region fallthrough
CT: control target
= control target key end

     0   :  { %s510_s12 = smov 0   ;;  %s512_s13 = smov 0   ;;  %s549_s0 = inlined_call_operand.vmem [shape: bf16[16,16], index: 0, kind: input, shape index: {}]   ;;  %s550_s1 = inlined_call_operand.vmem [shape: f32[2,16,8], index: 1, kind: input, shape index: {}]   ;;  %s551_s2 = inlined_call_operand.vmem [shape: f32[2,16,8], index: 2, kind: output, shape index: {0}]   ;;  %s552_s3 = inlined_call_operand.vmem [shape: f32[2,16,8], index: 3, kind: output, shape index: {1}]  }
   0x1   :  { %s514_s14 = smov 0  }
   0x2 LB: > { %s26_s15 = sadd.s32 1, %s484_s13  ;;  %p423_p0 = scmp.ge.s32.totalorder %s488_s14, 1  ;;  %s488_s14 = sphi %s514_s14, %s14_s14   ;;  %s484_s13 = sphi %s512_s13, %s554_s13   ;;  %s480_s12 = sphi %s510_s12, %s553_s12  }
   0x3   : > { %p28_p1 = scmp.ge.s32.totalorder %s26_s15, 2  ;;  %p161_p2 = scmp.lt.s32.totalorder %s488_s14, 3 }
   0x5   : > { %s556_s15 = smov (%p28_p1, %s26_s15), 0  ;;  %p162_p3 = pnand %p423_p0, %p161_p2 }
   0x6   : > { %p199_p4 = scmp.lt.s32.totalorder (!%p162_p3), %s480_s12, 1 }
   0x7   : > { %165 = sbr.rel (%p162_p3) target bundleno = 168 (0xa8), region = 28 }
   0xc   : > { %s558_s12 = smov (!%p199_p4, %s480_s12), 1  ;;  %v441_v11 = vld [vmem:[%s549_s0] sm:$0xff]  ;;  %vm240_vm0 = vcmask 130048   ;;  %vm280_vm1 = vcmask 64512  }
   0xd   : > { %s438_s16 = sshll.u32 %s558_s12, 4 }
   0xe   : > { %s206_s19 = scalar_lea.vmem %s550_s1, %s438_s16  ;;  %s222_s24 = scalar_lea.vmem %s552_s3, %s438_s16 }
   0xf   : > { %v226_v0 = vld [vmem:[%s206_s19] sm:$0xff]  ;;  %v227_v1 = vld [vmem:[%s206_s19 + $0x8] sm:$0xff]  ;;  %s214_s27 = scalar_lea.vmem %s551_s2, %s438_s16 }
  0x10   : > { %v228_v2 = vpack.c.bf16 %v226_v0, %v226_v0  ;;  %v229_v3 = vpack.c.bf16 %v227_v1, %v227_v1 }
  0x12   : > { %v260_v4 = vunpack.c.l.b16 %v228_v2  ;;  %v261_v5 = vunpack.c.l.b16 %v229_v3  ;;  %v230_v6 = vunpack.c.l.bf16 %v228_v2  ;;  %v231_v7 = vunpack.c.l.bf16 %v229_v3 }
  0x14   : > { %v262_v8 = vpack.c.b16 %v261_v5, %v260_v4  ;;  %v232_v9 = vsub.f32 %v226_v0, %v230_v6  ;;  %v233_v10 = vsub.f32 %v227_v1, %v231_v7 }
  0x16   : > { %271 = vmatpush.bf16.msra.mxu1 %v262_v8  ;;  %v234_v12 = vpack.c.bf16 %v233_v10, %v232_v9 }
  0x18   : > { %251 = vmatpush.bf16.msra.mxu0 %v234_v12 }
  0x19   : > { %435 = vmatmul.msk.bf16.vlgmr.msra.gmra.mxu1 %vm240_vm0, %v441_v11 }
  0x1b   : > { %434 = vmatmul.msk.bf16.vlgmr.msra.gmra.mxu0 %vm240_vm0, %v441_v11 }
  0x96   : > { %v273_v13 = vpop.f32.mrf.mxu1 }
  0x98   : > { %v253_v14 = vpop.f32.mrf.mxu0 }
  0x99   : > { %v274_v15 = vadd.f32 %v273_v13, %v253_v14 }
  0x9b   : > { %v278_v16 = vmul.f32 0.2, %v274_v15 }
  0x9d   : > { %281 = vst.msk [vmem:[%s222_s24] sm:$0xff] %vm280_vm1, %v278_v16  ;;  %v285_v17 = vsub.f32 %v226_v0, %v278_v16 }
  0x9e   : > { %v275_v18 = vpop.f32.mrf.mxu1 }
  0x9f   : > { %287 = vst.msk [vmem:[%s214_s27] sm:$0xff] %vm280_vm1, %v285_v17 }
  0xa0   : > { %v255_v19 = vpop.f32.mrf.mxu0 }
  0xa1   : > { %v276_v20 = vadd.f32 %v275_v18, %v255_v19 }
  0xa3   : > { %v279_v21 = vmul.f32 0.2, %v276_v20 }
  0xa5   : > { %282 = vst.msk [vmem:[%s222_s24 + $0x8] sm:$0xff] %vm280_vm1, %v279_v21  ;;  %v286_v22 = vsub.f32 %v227_v1, %v279_v21 }
  0xa7   : > { %288 = vst.msk [vmem:[%s214_s27 + $0x8] sm:$0xff] %vm280_vm1, %v286_v22 }
  0xa8 PF: > { %s14_s14 = sadd.s32 1, %s488_s14   ;;  %s553_s12 = smov %s484_s13 }
  0xa9   : > { %p11_p5 = scmp.ge.s32.totalorder %s14_s14, 4   ;;  %s554_s13 = smov %s556_s15 }
  0xab   :  { %13 = sbr.rel (!%p11_p5) target bundleno = 2 (0x2), region = 70 }

</bundles_post_ra>
